<compile_context>
chip_gen: v6e
topology: v6e:2x2x1
jax: 0.10.0
libtpu: 0.0.40
codegen_flags: <defaults>
</compile_context>

<pallas_src>
import functools

import jax
import jax.numpy as jnp
from jax.experimental import pallas as pl
from jax.experimental.pallas import tpu as pltpu


def _make_loss_kernel(margin: float, eps: float, batch: int, tile_b: int):
    def loss_kernel(x1_ref, x2_ref, lbl_ref, out_ref):
        # Upcast inside the kernel (keeps HBM traffic at the input dtype width).
        x1 = x1_ref[...].astype(jnp.float32)      # (tile_b, D)
        x2 = x2_ref[...].astype(jnp.float32)      # (tile_b, D)
        lbl = lbl_ref[...].astype(jnp.float32)    # (tile_b, 1)

        # cosine similarity along the feature axis (torch F.cosine_similarity, dim=1)
        dot = jnp.sum(x1 * x2, axis=1, keepdims=True)     # (tile_b, 1)
        n1sq = jnp.sum(x1 * x1, axis=1, keepdims=True)    # (tile_b, 1)
        n2sq = jnp.sum(x2 * x2, axis=1, keepdims=True)    # (tile_b, 1)

        eps2 = jnp.float32(eps) * jnp.float32(eps)
        # max commutes with sqrt:  1/(max(n1,eps)*max(n2,eps)) == rsqrt(max(n1sq,eps^2)*max(n2sq,eps^2))
        inv_denom = jax.lax.rsqrt(jnp.maximum(n1sq, eps2) * jnp.maximum(n2sq, eps2))
        cos = dot * inv_denom                              # (tile_b, 1)

        # (1 - label) * (1 - cos)^2 / 4 + label * (cos * (cos < margin))^2
        lt_mask = (cos < jnp.float32(margin)).astype(jnp.float32)
        per_ex = (1.0 - lbl) * ((1.0 - cos) ** 2) * 0.25 \
                 + lbl * (cos * lt_mask) ** 2              # (tile_b, 1)

        # Mask rows of the last (partial) tile so padded/garbage rows contribute 0.
        row = (jax.lax.broadcasted_iota(jnp.int32, per_ex.shape, 0)
               + pl.program_id(0) * tile_b)
        per_ex = jnp.where(row < batch, per_ex, 0.0)

        out_ref[...] = per_ex

    return loss_kernel


def _pick_tile_b(batch: int, feat: int, itemsize: int,
                 vmem_budget_bytes: int = 12 * 1024 * 1024) -> int:
    """Largest batch tile whose 2-input x 2-buffer footprint fits the budget."""
    per_row = 2 * 2 * feat * itemsize          # x1 + x2, double-buffered
    tile = vmem_budget_bytes // max(per_row, 1)
    tile = min(tile, 1024)                     # diminishing returns past ~1K rows
    tile = max(8, (tile // 8) * 8)             # sublane-aligned
    if tile >= batch:
        return batch                           # single block == full array dims (any B)
    return tile


@functools.partial(jax.jit, static_argnames=("margin", "eps", "tile_b"))
def cosine_contrastive_loss(output1, output2, label, margin: float = 0.4,
                            eps: float = 1e-8, tile_b: int | None = None):
    """output1, output2: (B, D); label: (B,). Returns scalar float32 loss."""
    B, D = output1.shape
    label2d = label.reshape(B, 1)

    if tile_b is None:
        tile_b = _pick_tile_b(B, D, jnp.dtype(output1.dtype).itemsize)
    grid = (pl.cdiv(B, tile_b),)

    per_ex = pl.pallas_call(
        _make_loss_kernel(margin, eps, B, tile_b),
        out_shape=jax.ShapeDtypeStruct((B, 1), jnp.float32),
        grid_spec=pltpu.PrefetchScalarGridSpec(
            num_scalar_prefetch=0,
            grid=grid,
            in_specs=[
                pl.BlockSpec((tile_b, D), lambda i: (i, 0)),
                pl.BlockSpec((tile_b, D), lambda i: (i, 0)),
                pl.BlockSpec((tile_b, 1), lambda i: (i, 0)),
            ],
            out_specs=pl.BlockSpec((tile_b, 1), lambda i: (i, 0)),
        ),
        compiler_params=pltpu.CompilerParams(
            dimension_semantics=("parallel",),
            vmem_limit_bytes=32 * 1024 * 1024,
        ),
    )(output1, output2, label2d)

    # Tiny final reduction in the wrapper (divide by the true B, in f32).
    return jnp.sum(per_ex) / jnp.float32(B)


def _reference(output1, output2, label, margin=0.4, eps=1e-8):
    x1 = output1.astype(jnp.float32)
    x2 = output2.astype(jnp.float32)
    dot = jnp.sum(x1 * x2, axis=1)
    n1 = jnp.linalg.norm(x1, axis=1)
    n2 = jnp.linalg.norm(x2, axis=1)
    cos = dot / (jnp.maximum(n1, eps) * jnp.maximum(n2, eps))
    mask = (cos < margin).astype(jnp.float32)
    return jnp.mean((1.0 - label) * ((1.0 - cos) ** 2) / 4.0
                    + label * (cos * mask) ** 2)


if __name__ == "__main__":
    key = jax.random.PRNGKey(0)
    k1, k2, k3, k4, k5, k6 = jax.random.split(key, 6)

    # Case 1: small shape consistent with the module (single tile).
    B, D = 8, 32
    output1 = jax.random.normal(k1, (B, D), dtype=jnp.float32)
    output2 = jax.random.normal(k2, (B, D), dtype=jnp.float32)
    label = jax.random.bernoulli(k3, 0.5, (B,)).astype(jnp.float32)

    loss = jax.block_until_ready(cosine_contrastive_loss(output1, output2, label, margin=0.4))
    ref = _reference(output1, output2, label, margin=0.4)
    assert jnp.allclose(loss, ref, atol=1e-5, rtol=1e-5), (loss, ref)

    # Case 2: multi-tile grid with a partial last tile (exercises masking) and
    # bf16 inputs (exercises in-kernel upcast; no host-side f32 copy).
    B2, D2 = 200, 128
    o1 = jax.random.normal(k4, (B2, D2), dtype=jnp.float32).astype(jnp.bfloat16)
    o2 = jax.random.normal(k5, (B2, D2), dtype=jnp.float32).astype(jnp.bfloat16)
    lbl2 = jax.random.bernoulli(k6, 0.5, (B2,)).astype(jnp.float32)

    loss2 = jax.block_until_ready(
        cosine_contrastive_loss(o1, o2, lbl2, margin=0.4, tile_b=64))
    ref2 = _reference(o1, o2, lbl2, margin=0.4)
    assert jnp.allclose(loss2, ref2, atol=1e-5, rtol=1e-5), (loss2, ref2)

    print("KERNEL_OK")
</pallas_src>

<mosaic_0001>
module attributes {stable_mosaic.version = 11 : i64} {
  func.func @loss_kernel(%arg0: i32, %arg1: memref<8x32xf32, #tpu.memory_space<vmem>>, %arg2: memref<8x32xf32, #tpu.memory_space<vmem>>, %arg3: memref<8x1xf32, #tpu.memory_space<vmem>>, %arg4: memref<8x1xf32, #tpu.memory_space<vmem>>) attributes {dimension_semantics = [#tpu.dimension_semantics<parallel>], iteration_bounds = array<i64: 1>, scalar_prefetch = 0 : i64, scratch_operands = 0 : i64, tpu.core_type = #tpu.core_type<tc>, window_params = [{transform_indices = @transform_0, window_bounds = array<i64: 8, 32>}, {transform_indices = @transform_1, window_bounds = array<i64: 8, 32>}, {transform_indices = @transform_2, window_bounds = array<i64: 8, 1>}, {transform_indices = @transform_3, window_bounds = array<i64: 8, 1>}]} {
    %c0 = arith.constant 0 : index
    %c0_0 = arith.constant 0 : index
    %0 = vector.load %arg1[%c0, %c0_0] : memref<8x32xf32, #tpu.memory_space<vmem>>, vector<8x32xf32>
    %c0_1 = arith.constant 0 : index
    %c0_2 = arith.constant 0 : index
    %1 = vector.load %arg2[%c0_1, %c0_2] : memref<8x32xf32, #tpu.memory_space<vmem>>, vector<8x32xf32>
    %c0_3 = arith.constant 0 : index
    %c0_4 = arith.constant 0 : index
    %2 = vector.load %arg3[%c0_3, %c0_4] : memref<8x1xf32, #tpu.memory_space<vmem>>, vector<8x1xf32>
    %3 = arith.mulf %0, %1 : vector<8x32xf32>
    %cst = arith.constant dense<0.000000e+00> : vector<8xf32>
    %4 = vector.multi_reduction <add>, %3, %cst [1] : vector<8x32xf32> to vector<8xf32>
    %5 = vector.shape_cast %4 : vector<8xf32> to vector<8x1xf32>
    %6 = arith.mulf %0, %0 : vector<8x32xf32>
    %cst_5 = arith.constant dense<0.000000e+00> : vector<8xf32>
    %7 = vector.multi_reduction <add>, %6, %cst_5 [1] : vector<8x32xf32> to vector<8xf32>
    %8 = vector.shape_cast %7 : vector<8xf32> to vector<8x1xf32>
    %9 = arith.mulf %1, %1 : vector<8x32xf32>
    %cst_6 = arith.constant dense<0.000000e+00> : vector<8xf32>
    %10 = vector.multi_reduction <add>, %9, %cst_6 [1] : vector<8x32xf32> to vector<8xf32>
    %11 = vector.shape_cast %10 : vector<8xf32> to vector<8x1xf32>
    %cst_7 = arith.constant 9.99999993E-9 : f32
    %cst_8 = arith.constant 9.99999993E-9 : f32
    %12 = arith.mulf %cst_7, %cst_8 : f32
    %13 = vector.broadcast %12 : f32 to vector<8x1xf32>
    %14 = arith.maximumf %8, %13 : vector<8x1xf32>
    %15 = vector.broadcast %12 : f32 to vector<8x1xf32>
    %16 = arith.maximumf %11, %15 : vector<8x1xf32>
    %17 = arith.mulf %14, %16 : vector<8x1xf32>
    %18 = math.rsqrt %17 : vector<8x1xf32>
    %19 = arith.mulf %5, %18 : vector<8x1xf32>
    %cst_9 = arith.constant 4.000000e-01 : f32
    %20 = vector.broadcast %cst_9 : f32 to vector<8x1xf32>
    %21 = arith.cmpf olt, %19, %20 : vector<8x1xf32>
    %22 = arith.extui %21 : vector<8x1xi1> to vector<8x1xi32>
    %23 = arith.sitofp %22 : vector<8x1xi32> to vector<8x1xf32>
    %cst_10 = arith.constant 1.000000e+00 : f32
    %24 = vector.broadcast %cst_10 : f32 to vector<8x1xf32>
    %25 = arith.subf %24, %2 : vector<8x1xf32>
    %cst_11 = arith.constant 1.000000e+00 : f32
    %26 = vector.broadcast %cst_11 : f32 to vector<8x1xf32>
    %27 = arith.subf %26, %19 : vector<8x1xf32>
    %28 = arith.mulf %27, %27 : vector<8x1xf32>
    %29 = arith.mulf %25, %28 : vector<8x1xf32>
    %cst_12 = arith.constant 2.500000e-01 : f32
    %30 = vector.broadcast %cst_12 : f32 to vector<8x1xf32>
    %31 = arith.mulf %29, %30 : vector<8x1xf32>
    %32 = arith.mulf %19, %23 : vector<8x1xf32>
    %33 = arith.mulf %32, %32 : vector<8x1xf32>
    %34 = arith.mulf %2, %33 : vector<8x1xf32>
    %35 = arith.addf %31, %34 : vector<8x1xf32>
    %36 = tpu.iota {dimensions = array<i32: 0>} : vector<8x1xi32>
    %c8_i32 = arith.constant 8 : i32
    %37 = arith.muli %arg0, %c8_i32 : i32
    %38 = vector.broadcast %37 : i32 to vector<8x1xi32>
    %39 = arith.addi %36, %38 : vector<8x1xi32>
    %c8_i32_13 = arith.constant 8 : i32
    %40 = vector.broadcast %c8_i32_13 : i32 to vector<8x1xi32>
    %41 = arith.cmpi slt, %39, %40 : vector<8x1xi32>
    %cst_14 = arith.constant 0.000000e+00 : f32
    %42 = vector.broadcast %cst_14 : f32 to vector<8x1xf32>
    %43 = arith.select %41, %35, %42 : vector<8x1xi1>, vector<8x1xf32>
    %c0_15 = arith.constant 0 : index
    %c0_16 = arith.constant 0 : index
    %44 = vector.load %arg4[%c0_15, %c0_16] : memref<8x1xf32, #tpu.memory_space<vmem>>, vector<8x1xf32>
    tpu.vector_store %arg4[%c0_15, %c0_16], %43 {strides = array<i32>} : memref<8x1xf32, #tpu.memory_space<vmem>>, vector<8x1xf32>,
    return
  }
  func.func @transform_0(%arg0: i32) -> (i32, i32) {
    %c0_i32 = arith.constant 0 : i32
    %c0_i32_0 = arith.constant 0 : i32
    return %arg0, %c0_i32 : i32, i32
  }
  func.func @transform_1(%arg0: i32) -> (i32, i32) {
    %c0_i32 = arith.constant 0 : i32
    %c0_i32_0 = arith.constant 0 : i32
    return %arg0, %c0_i32 : i32, i32
  }
  func.func @transform_2(%arg0: i32) -> (i32, i32) {
    %c0_i32 = arith.constant 0 : i32
    %c0_i32_0 = arith.constant 0 : i32
    return %arg0, %c0_i32 : i32, i32
  }
  func.func @transform_3(%arg0: i32) -> (i32, i32) {
    %c0_i32 = arith.constant 0 : i32
    %c0_i32_0 = arith.constant 0 : i32
    return %arg0, %c0_i32 : i32, i32
  }
}

</mosaic_0001>

<bundles_post_ra>
// kernel: cosine_contrastive_loss.1
= control target key start
LH: loop header
LB: loop body
LE: loop exit
PB: predicated region body
PF: predicated region fallthrough
CT: control target
= control target key end

     0   :  { %8 = vsyncpa [#allocation3], 0  ;;  %s100_s12 = smov [#allocation2]   ;;  %s134_s0 = inlined_call_operand.vmem [shape: f32[8,32], index: 0, kind: input, shape index: {}]   ;;  %s135_s1 = inlined_call_operand.hbm [shape: f32[8,32], index: 1, kind: input, shape index: {}]   ;;  %s136_s2 = inlined_call_operand.vmem [shape: f32[8,1], index: 2, kind: input, shape index: {}]   ;;  %s137_s3 = inlined_call_operand.vmem [shape: f32[8,1], index: 3, kind: output, shape index: {}]  }
   0x1   :  { %s17_s13 = sshll.u32 %s100_s12, 4  ;;  %s18_s13 = int_to_ptr.vmem [resolvable:$true] %s17_s13 }
   0x2   :  { %s86_s14 = scalar_lea.vmem %s18_s13, 128  ;;  %p91_p1 = scmp.lt.s32.totalorder %s18_s13, %s18_s13 }
   0x3   :  { %p87_p0 = scmp.ne.s32.totalorder %s18_s13, %s86_s14  ;;  %p92_p2 = scmp.lt.s32.totalorder %s86_s14, %s86_s14 }
   0x5   :  { %p93_p3 = por %p92_p2, %p91_p1 }
   0x7   :  { %p94_p4 = pnand %p93_p3, %p87_p0 }
   0x9   :  { %97 = shalt.err (!%p94_p4)
}
   0xa   :  { %20 = dma.hbm_to_vmem [thread:$0]  %s135_s1, 128, %s18_s13, [#allocation3]  }
   0xb   :  { %98 = dma.done.wait [#allocation3], 128  }
   0xc   :  { %99 = vsyncadd [#allocation3], 4294967168  ;;  %v26_v0 = vld [vmem:[%s134_s0] sm:$0xff]  ;;  %vm30_vm0 = vcmask 261120   ;;  %v101_v19 = vmov 0.0   ;;  %vm66_vm2 = vcmask 7168  }
   0xd   :  { %v27_v1 = vld [vmem:[#allocation2] sm:$0xff]  ;;  %v34_v2 = vmul.f32 %v26_v0, %v26_v0 }
   0xe   :  { %v38_v3 = vmul.f32 %v27_v1, %v27_v1  ;;  %v29_v4 = vmul.f32 %v27_v1, %v26_v0  ;;  %v28_v15 = vld [vmem:[%s136_s2] sm:$0xff] }
   0xf   :  { %v35_v5 = vsel %vm30_vm0, %v34_v2, 0.0  ;;  %v50_v17 = vsub.f32 1.0, %v28_v15 }
  0x10   :  { %v31_v6 = vsel %vm30_vm0, %v29_v4, 0.0  ;;  %36 = vadd.xlane.f32.xlu0 %v35_v5  ;;  %v39_v7 = vsel %vm30_vm0, %v38_v3, 0.0 }
  0x11   :  { %32 = vadd.xlane.f32.xlu1 %v31_v6 }
  0x14   :  { %40 = vadd.xlane.f32.xlu0 %v39_v7 }
  0x99   :  { %v37_v8 = vpop.xlane.xlu0 %36 }
  0x9a   :  { %v42_v10 = vmax.f32 %v37_v8, 1e-16  ;;  %v33_v13 = vpop.xlane.xlu1 %32 }
  0x9d   :  { %v41_v9 = vpop.xlane.xlu0 %40 }
  0x9e   :  { %v43_v11 = vmax.f32 %v41_v9, 1e-16 }
  0xa0   :  { %v44_v12 = vmul.f32 %v43_v11, %v42_v10 }
  0xa2   :  { %76 = vrsqrt.f32 %v44_v12 }
  0xaf   :  { %v77_v14 = vpop.eup %76 }
  0xb0   :  { %v46_v16 = vmul.f32 %v77_v14, %v33_v13 }
  0xb2   :  { %vm47_vm1 = vcmp.lt.f32.partialorder %v46_v16, 0.4  ;;  %v51_v18 = vsub.f32 1.0, %v46_v16 }
  0xb3   :  { %v73_v20 = vsel %vm47_vm1, 1.0, %v101_v19 }
  0xb4   :  { %v52_v21 = vmul.f32 %v51_v18, %v51_v18  ;;  %v55_v22 = vmul.f32 %v73_v20, %v46_v16 }
  0xb6   :  { %v53_v23 = vmul.f32 %v52_v21, %v50_v17  ;;  %v56_v24 = vmul.f32 %v55_v22, %v55_v22 }
  0xb8   :  { %v54_v25 = vmul.f32 0.25, %v53_v23  ;;  %v57_v26 = vmul.f32 %v56_v24, %v28_v15 }
  0xba   :  { %v58_v27 = vadd.f32 %v57_v26, %v54_v25 }
  0xbc   :  { %67 = vst.msk [vmem:[%s137_s3] sm:$0xff] %vm66_vm2, %v58_v27 }
  0xbd   :  { %72 = vsyncpa [#allocation3], 1 }

</bundles_post_ra>
